<compile_context>
chip_gen: v5e
topology: v5e:2x2
jax: 0.10.0
libtpu: 0.0.40
codegen_flags: <defaults>
</compile_context>

<pallas_src>
import jax
import jax.numpy as jnp
from jax.experimental import pallas as pl
from jax.experimental.pallas import tpu as pltpu


# Packed activation layout (lanes):  [0:15] parts, [15] 1.0 (fc1 bias lane),
#                                    [16:19] whole, [19] 1.0 (fc_2 bias lane)
# Packed parameter layout (8, 32), rows j = 0..2 (output neuron):
#   [0:15]  fc1.weight[j, :]     [15]  fc1.bias[j]
#   [16:19] fc_2.weight[j, :3]   [19]  fc_2.bias[j]
#   [20:23] fc_2.weight[j, 3:6]
_FEAT_W = 20


def _fusion_kernel(feat_ref, p_ref, o_ref):
    feat = feat_ref[...].astype(jnp.float32)             # (TB, 20)
    x_aug = feat[:, 0:16]                                 # parts ++ 1.0
    whole_aug = jnp.maximum(feat[:, 16:20], 0.0)          # relu(whole) ++ 1.0

    # fc1 + ReLU, bias folded into lane 15.  (Dropout is identity in eval mode.)
    h = []
    for j in range(3):
        w1_j = p_ref[j:j + 1, 0:16]                       # (1, 16)
        h.append(jnp.maximum(
            jnp.sum(x_aug * w1_j, axis=-1, keepdims=True), 0.0))    # (TB, 1)

    # fc_2 on concat(relu(whole), h)  (relu(h) == h since h >= 0), bias via lane 19.
    outs = []
    for j in range(3):
        w2w_j = p_ref[j:j + 1, 16:20]                     # (1, 4): w2[j,:3], b2[j]
        acc = jnp.sum(whole_aug * w2w_j, axis=-1, keepdims=True)    # (TB, 1)
        for k in range(3):
            acc = acc + h[k] * p_ref[j:j + 1, 20 + k:21 + k]        # (1,1) coeff
        outs.append(acc)

    o_ref[...] = jnp.concatenate(outs, axis=-1).astype(o_ref.dtype)  # (TB, 3)


def prepack_params(w1, b1, w2, b2):
    """One-time repacking of fc1/fc_2 parameters into a single (8, 32) VMEM tile."""
    packed = jnp.zeros((8, 32), dtype=jnp.float32)
    packed = packed.at[0:3, 0:15].set(w1.astype(jnp.float32))
    packed = packed.at[0:3, 15].set(b1.astype(jnp.float32))
    packed = packed.at[0:3, 16:19].set(w2[:, 0:3].astype(jnp.float32))
    packed = packed.at[0:3, 19].set(b2.astype(jnp.float32))
    packed = packed.at[0:3, 20:23].set(w2[:, 3:6].astype(jnp.float32))
    return packed


def fusion_forward_batched(parts, whole, packed_params, *, block_b=256):
    """Batched forward.

    parts : (B, 15) = concat(l_eye, l_lips, nose, r_eye, r_lips) per row
    whole : (B, 3)
    packed_params : (8, 32) from prepack_params
    Returns (B, 3).
    """
    B = parts.shape[0]
    ones = jnp.ones((B, 1), dtype=jnp.float32)
    feat = jnp.concatenate(
        [parts.astype(jnp.float32), ones, whole.astype(jnp.float32), ones],
        axis=-1)                                          # (B, 20)

    # Choose a sublane-aligned batch block (all trace-time Python).
    if B <= 8:
        b_pad, tb = B, B
    else:
        b_pad = ((B + 7) // 8) * 8
        if b_pad != B:
            feat = jnp.pad(feat, ((0, b_pad - B), (0, 0)))
        tb = min(block_b, b_pad)
        tb -= tb % 8
        while b_pad % tb:
            tb -= 8

    out = pl.pallas_call(
        _fusion_kernel,
        out_shape=jax.ShapeDtypeStruct((b_pad, 3), jnp.float32),
        grid=(b_pad // tb,),
        in_specs=[
            pl.BlockSpec((tb, _FEAT_W), lambda i: (i, 0)),   # activations: 1 DMA/block
            pl.BlockSpec((8, 32), lambda i: (0, 0)),         # params: resident tile
        ],
        out_specs=pl.BlockSpec((tb, 3), lambda i: (i, 0)),
        compiler_params=pltpu.CompilerParams(
            dimension_semantics=("parallel",)),              # v7x: both TCs share batch
    )(feat, packed_params)

    return out[:B] if b_pad != B else out


def fusion_forward(whole, l_eye, l_lips, nose, r_eye, r_lips, packed_params):
    """Single-sample forward matching the PyTorch module (1-D length-3 features)."""
    parts = jnp.concatenate(
        [l_eye, l_lips, nose, r_eye, r_lips], axis=0).reshape(1, 15)
    return fusion_forward_batched(parts, whole.reshape(1, 3), packed_params)[0]


if __name__ == "__main__":
    key = jax.random.PRNGKey(0)
    ks = jax.random.split(key, 12)

    # Parameters (fc1: 15->3, fc_2: 6->3), packed once at init.
    w1 = 0.1 * jax.random.normal(ks[0], (3, 15), dtype=jnp.float32)
    b1 = 0.1 * jax.random.normal(ks[1], (3,), dtype=jnp.float32)
    w2 = 0.1 * jax.random.normal(ks[2], (3, 6), dtype=jnp.float32)
    b2 = 0.1 * jax.random.normal(ks[3], (3,), dtype=jnp.float32)
    packed = prepack_params(w1, b1, w2, b2)

    def ref_forward(whole, l_eye, l_lips, nose, r_eye, r_lips):
        x = jnp.concatenate([l_eye, l_lips, nose, r_eye, r_lips], axis=0)
        h = jnp.maximum(w1 @ x + b1, 0.0)
        z = jnp.maximum(jnp.concatenate([whole, h], axis=0), 0.0)
        return w2 @ z + b2

    # --- single-sample path (module semantics) ---
    whole = jax.random.normal(ks[4], (3,), dtype=jnp.float32)
    l_eye = jax.random.normal(ks[5], (3,), dtype=jnp.float32)
    l_lips = jax.random.normal(ks[6], (3,), dtype=jnp.float32)
    nose = jax.random.normal(ks[7], (3,), dtype=jnp.float32)
    r_eye = jax.random.normal(ks[8], (3,), dtype=jnp.float32)
    r_lips = jax.random.normal(ks[9], (3,), dtype=jnp.float32)

    y1 = jax.block_until_ready(
        fusion_forward(whole, l_eye, l_lips, nose, r_eye, r_lips, packed))
    r1 = ref_forward(whole, l_eye, l_lips, nose, r_eye, r_lips)
    assert jnp.allclose(y1, r1, atol=1e-5, rtol=1e-5), "single-sample mismatch"

    # --- batched path (batch on sublanes, features on lanes) ---
    B = 8
    whole_b = jax.random.normal(ks[10], (B, 3), dtype=jnp.float32)
    parts_b = jax.random.normal(ks[11], (B, 15), dtype=jnp.float32)
    y_b = jax.block_until_ready(fusion_forward_batched(parts_b, whole_b, packed))
    r_b = jax.vmap(lambda wb, pb: ref_forward(
        wb, pb[0:3], pb[3:6], pb[6:9], pb[9:12], pb[12:15]))(whole_b, parts_b)
    assert jnp.allclose(y_b, r_b, atol=1e-5, rtol=1e-5), "batched mismatch"

    print("KERNEL_OK")
</pallas_src>

<mosaic_0001>
module attributes {stable_mosaic.version = 11 : i64} {
  func.func @_fusion_kernel(%arg0: i32, %arg1: memref<1x20xf32, #tpu.memory_space<vmem>>, %arg2: memref<8x32xf32, #tpu.memory_space<vmem>>, %arg3: memref<1x3xf32, #tpu.memory_space<vmem>>) attributes {dimension_semantics = [#tpu.dimension_semantics<parallel>], iteration_bounds = array<i64: 1>, scalar_prefetch = 0 : i64, scratch_operands = 0 : i64, tpu.core_type = #tpu.core_type<tc>, window_params = [{transform_indices = @transform_0, window_bounds = array<i64: 1, 20>}, {pipeline_mode = #tpu.pipeline_mode<synchronous>, transform_indices = @transform_1, window_bounds = array<i64: 8, 32>}, {transform_indices = @transform_2, window_bounds = array<i64: 1, 3>}]} {
    %c0 = arith.constant 0 : index
    %c0_0 = arith.constant 0 : index
    %0 = vector.load %arg1[%c0, %c0_0] : memref<1x20xf32, #tpu.memory_space<vmem>>, vector<1x20xf32>
    %1 = vector.extract_strided_slice %0 {offsets = [0, 0], sizes = [1, 16], strides = [1, 1]} : vector<1x20xf32> to vector<1x16xf32>
    %2 = vector.extract_strided_slice %0 {offsets = [0, 16], sizes = [1, 4], strides = [1, 1]} : vector<1x20xf32> to vector<1x4xf32>
    %cst = arith.constant 0.000000e+00 : f32
    %3 = vector.broadcast %cst : f32 to vector<1x4xf32>
    %4 = arith.maximumf %2, %3 : vector<1x4xf32>
    %c0_1 = arith.constant 0 : index
    %c0_2 = arith.constant 0 : index
    %5 = vector.load %arg2[%c0_1, %c0_2] : memref<8x32xf32, #tpu.memory_space<vmem>>, vector<1x16xf32>
    %6 = arith.mulf %1, %5 : vector<1x16xf32>
    %cst_3 = arith.constant dense<0.000000e+00> : vector<1xf32>
    %7 = vector.multi_reduction <add>, %6, %cst_3 [1] : vector<1x16xf32> to vector<1xf32>
    %8 = vector.shape_cast %7 : vector<1xf32> to vector<1x1xf32>
    %cst_4 = arith.constant 0.000000e+00 : f32
    %9 = vector.broadcast %cst_4 : f32 to vector<1x1xf32>
    %10 = arith.maximumf %8, %9 : vector<1x1xf32>
    %c1 = arith.constant 1 : index
    %c0_5 = arith.constant 0 : index
    %11 = vector.load %arg2[%c1, %c0_5] : memref<8x32xf32, #tpu.memory_space<vmem>>, vector<1x16xf32>
    %12 = arith.mulf %1, %11 : vector<1x16xf32>
    %cst_6 = arith.constant dense<0.000000e+00> : vector<1xf32>
    %13 = vector.multi_reduction <add>, %12, %cst_6 [1] : vector<1x16xf32> to vector<1xf32>
    %14 = vector.shape_cast %13 : vector<1xf32> to vector<1x1xf32>
    %cst_7 = arith.constant 0.000000e+00 : f32
    %15 = vector.broadcast %cst_7 : f32 to vector<1x1xf32>
    %16 = arith.maximumf %14, %15 : vector<1x1xf32>
    %c2 = arith.constant 2 : index
    %c0_8 = arith.constant 0 : index
    %17 = vector.load %arg2[%c2, %c0_8] : memref<8x32xf32, #tpu.memory_space<vmem>>, vector<1x16xf32>
    %18 = arith.mulf %1, %17 : vector<1x16xf32>
    %cst_9 = arith.constant dense<0.000000e+00> : vector<1xf32>
    %19 = vector.multi_reduction <add>, %18, %cst_9 [1] : vector<1x16xf32> to vector<1xf32>
    %20 = vector.shape_cast %19 : vector<1xf32> to vector<1x1xf32>
    %cst_10 = arith.constant 0.000000e+00 : f32
    %21 = vector.broadcast %cst_10 : f32 to vector<1x1xf32>
    %22 = arith.maximumf %20, %21 : vector<1x1xf32>
    %c0_11 = arith.constant 0 : index
    %c16 = arith.constant 16 : index
    %23 = vector.load %arg2[%c0_11, %c16] : memref<8x32xf32, #tpu.memory_space<vmem>>, vector<1x4xf32>
    %24 = arith.mulf %4, %23 : vector<1x4xf32>
    %cst_12 = arith.constant dense<0.000000e+00> : vector<1xf32>
    %25 = vector.multi_reduction <add>, %24, %cst_12 [1] : vector<1x4xf32> to vector<1xf32>
    %26 = vector.shape_cast %25 : vector<1xf32> to vector<1x1xf32>
    %c0_13 = arith.constant 0 : index
    %c20 = arith.constant 20 : index
    %27 = vector.load %arg2[%c0_13, %c20] : memref<8x32xf32, #tpu.memory_space<vmem>>, vector<1x1xf32>
    %28 = arith.mulf %10, %27 : vector<1x1xf32>
    %29 = arith.addf %26, %28 : vector<1x1xf32>
    %c0_14 = arith.constant 0 : index
    %c21 = arith.constant 21 : index
    %30 = vector.load %arg2[%c0_14, %c21] : memref<8x32xf32, #tpu.memory_space<vmem>>, vector<1x1xf32>
    %31 = arith.mulf %16, %30 : vector<1x1xf32>
    %32 = arith.addf %29, %31 : vector<1x1xf32>
    %c0_15 = arith.constant 0 : index
    %c22 = arith.constant 22 : index
    %33 = vector.load %arg2[%c0_15, %c22] : memref<8x32xf32, #tpu.memory_space<vmem>>, vector<1x1xf32>
    %34 = arith.mulf %22, %33 : vector<1x1xf32>
    %35 = arith.addf %32, %34 : vector<1x1xf32>
    %c1_16 = arith.constant 1 : index
    %c16_17 = arith.constant 16 : index
    %36 = vector.load %arg2[%c1_16, %c16_17] : memref<8x32xf32, #tpu.memory_space<vmem>>, vector<1x4xf32>
    %37 = arith.mulf %4, %36 : vector<1x4xf32>
    %cst_18 = arith.constant dense<0.000000e+00> : vector<1xf32>
    %38 = vector.multi_reduction <add>, %37, %cst_18 [1] : vector<1x4xf32> to vector<1xf32>
    %39 = vector.shape_cast %38 : vector<1xf32> to vector<1x1xf32>
    %c1_19 = arith.constant 1 : index
    %c20_20 = arith.constant 20 : index
    %40 = vector.load %arg2[%c1_19, %c20_20] : memref<8x32xf32, #tpu.memory_space<vmem>>, vector<1x1xf32>
    %41 = arith.mulf %10, %40 : vector<1x1xf32>
    %42 = arith.addf %39, %41 : vector<1x1xf32>
    %c1_21 = arith.constant 1 : index
    %c21_22 = arith.constant 21 : index
    %43 = vector.load %arg2[%c1_21, %c21_22] : memref<8x32xf32, #tpu.memory_space<vmem>>, vector<1x1xf32>
    %44 = arith.mulf %16, %43 : vector<1x1xf32>
    %45 = arith.addf %42, %44 : vector<1x1xf32>
    %c1_23 = arith.constant 1 : index
    %c22_24 = arith.constant 22 : index
    %46 = vector.load %arg2[%c1_23, %c22_24] : memref<8x32xf32, #tpu.memory_space<vmem>>, vector<1x1xf32>
    %47 = arith.mulf %22, %46 : vector<1x1xf32>
    %48 = arith.addf %45, %47 : vector<1x1xf32>
    %c2_25 = arith.constant 2 : index
    %c16_26 = arith.constant 16 : index
    %49 = vector.load %arg2[%c2_25, %c16_26] : memref<8x32xf32, #tpu.memory_space<vmem>>, vector<1x4xf32>
    %50 = arith.mulf %4, %49 : vector<1x4xf32>
    %cst_27 = arith.constant dense<0.000000e+00> : vector<1xf32>
    %51 = vector.multi_reduction <add>, %50, %cst_27 [1] : vector<1x4xf32> to vector<1xf32>
    %52 = vector.shape_cast %51 : vector<1xf32> to vector<1x1xf32>
    %c2_28 = arith.constant 2 : index
    %c20_29 = arith.constant 20 : index
    %53 = vector.load %arg2[%c2_28, %c20_29] : memref<8x32xf32, #tpu.memory_space<vmem>>, vector<1x1xf32>
    %54 = arith.mulf %10, %53 : vector<1x1xf32>
    %55 = arith.addf %52, %54 : vector<1x1xf32>
    %c2_30 = arith.constant 2 : index
    %c21_31 = arith.constant 21 : index
    %56 = vector.load %arg2[%c2_30, %c21_31] : memref<8x32xf32, #tpu.memory_space<vmem>>, vector<1x1xf32>
    %57 = arith.mulf %16, %56 : vector<1x1xf32>
    %58 = arith.addf %55, %57 : vector<1x1xf32>
    %c2_32 = arith.constant 2 : index
    %c22_33 = arith.constant 22 : index
    %59 = vector.load %arg2[%c2_32, %c22_33] : memref<8x32xf32, #tpu.memory_space<vmem>>, vector<1x1xf32>
    %60 = arith.mulf %22, %59 : vector<1x1xf32>
    %61 = arith.addf %58, %60 : vector<1x1xf32>
    %62 = tpu.concatenate %35, %48, %61 in 1 : vector<1x1xf32>, vector<1x1xf32>, vector<1x1xf32> -> vector<1x3xf32>
    %c0_34 = arith.constant 0 : index
    %c0_35 = arith.constant 0 : index
    %63 = vector.load %arg3[%c0_34, %c0_35] : memref<1x3xf32, #tpu.memory_space<vmem>>, vector<1x3xf32>
    tpu.vector_store %arg3[%c0_34, %c0_35], %62 {strides = array<i32>} : memref<1x3xf32, #tpu.memory_space<vmem>>, vector<1x3xf32>,
    return
  }
  func.func @transform_0(%arg0: i32) -> (i32, i32) {
    %c0_i32 = arith.constant 0 : i32
    %c0_i32_0 = arith.constant 0 : i32
    return %arg0, %c0_i32 : i32, i32
  }
  func.func @transform_1(%arg0: i32) -> (i32, i32) {
    %c0_i32 = arith.constant 0 : i32
    %c0_i32_0 = arith.constant 0 : i32
    %c0_i32_1 = arith.constant 0 : i32
    return %c0_i32, %c0_i32_0 : i32, i32
  }
  func.func @transform_2(%arg0: i32) -> (i32, i32) {
    %c0_i32 = arith.constant 0 : i32
    %c0_i32_0 = arith.constant 0 : i32
    return %arg0, %c0_i32 : i32, i32
  }
}

</mosaic_0001>

<bundles_post_ra>
// kernel: tpu_custom_call.1
= control target key start
LH: loop header
LB: loop body
LE: loop exit
PB: predicated region body
PF: predicated region fallthrough
CT: control target
= control target key end

     0   :  { %7 = vsyncpa [#allocation3], 0  ;;  %s304_s0 = inlined_call_operand.hbm [shape: f32[1,20], index: 0, kind: input, shape index: {}]   ;;  %s305_s1 = inlined_call_operand.hbm [shape: f32[8,32], index: 1, kind: input, shape index: {}]   ;;  %s306_s2 = inlined_call_operand.hbm [shape: f32[1,3], index: 2, kind: output, shape index: {}]  }
   0x1   :  { %8 = vsyncpa [#allocation6], 0 }
   0x2   :  { %9 = vsyncpa [#allocation4], 0  ;;  %s15_s11 = sshll.u32 %s304_s0, 4  ;;  %s254_s12 = smov [#allocation2]   ;;  %s16_s11 = int_to_ptr.hbm [resolvable:$true] %s15_s11 }
   0x3   :  { %s17_s13 = sshll.u32 %s254_s12, 4  ;;  %s26_s16 = sshll.u32 %s305_s1, 4  ;;  %s18_s13 = int_to_ptr.vmem [resolvable:$true] %s17_s13  ;;  %s27_s16 = int_to_ptr.hbm [resolvable:$true] %s26_s16 }
   0x4   :  { %20 = dma.hbm_to_vmem [thread:$0]  %s16_s11, 16, %s18_s13, [#allocation3]  }
   0x5   :  { %s255_s17 = smov [#allocation5]  }
   0x6   :  { %s28_s18 = sshll.u32 %s255_s17, 4  ;;  %s29_s18 = int_to_ptr.vmem [resolvable:$true] %s28_s18 }
   0x7   :  { %31 = dma.hbm_to_vmem [thread:$0]  %s27_s16, 128, %s29_s18, [#allocation6]  }
   0x8   :  { %248 = dma.done.wait [#allocation3], 16  }
   0x9   :  { %249 = vsyncadd [#allocation3], 4294967280 }
   0xa   :  { %250 = dma.done.wait [#allocation6], 128  }
   0xb   :  { %251 = vsyncadd [#allocation6], 4294967168  ;;  %vm44_vm0 = vcmask 122880   ;;  %v40_v0 = vld [vmem:[#allocation2] sm:$0x1]  ;;  %s256_s0 = smov 112  }
   0xc   :  { %v284_v1 = vld [vmem:[#allocation5 + $0x1] sm:$0x1]  ;;  %v286_v2 = vld [vmem:[#allocation5 + $0x2] sm:$0x1]  ;;  %v41_v4 = vmax.f32 %v40_v0, 0.0  ;;  %vm67_vm1 = vcmask 24576  }
   0xd   :  { %v50_v3 = vmul.f32 %v284_v1, %v40_v0  ;;  %v42_v10 = vld [vmem:[#allocation5] sm:$0x1]  ;;  %v56_v13 = vmul.f32 %v286_v2, %v40_v0  ;;  %s257_s1 = smov 127   ;;  %s258_s19 = smov 126   ;;  %vm143_vm2 = vcmask 7168   ;;  %vm145_vm3 = vcmask 15360  }
   0xe   :  { %v85_v6 = vmul.f32 %v284_v1, %v41_v4  ;;  %v108_v7 = vmul.f32 %v286_v2, %v41_v4  ;;  %v61_v11 = vmul.f32 %v42_v10, %v41_v4  ;;  %v43_v15 = vmul.f32 %v42_v10, %v40_v0  ;;  %s259_s20 = smov 108   ;;  %s260_s21 = smov 110  }
   0xf   :  { %v51_v5 = vsel %vm44_vm0, %v50_v3, 0.0  ;;  %v57_v14 = vsel %vm44_vm0, %v56_v13, 0.0  ;;  %s261_s22 = smov 109   ;;  %s262_s23 = smov [#allocation7]   ;;  %vm147_vm4 = vcmask 16384  }
  0x10   :  { %52 = vadd.xlane.f32.xlu0 %v51_v5  ;;  %v87_v8 = vperm.slane %v85_v6, 0  ;;  %v110_v9 = vperm.slane %v108_v7, 0  ;;  %v63_v12 = vperm.slane %v61_v11, 0  ;;  %v45_v16 = vsel %vm44_vm0, %v43_v15, 0.0  ;;  %s154_s24 = sshll.u32 %s262_s23, 4  ;;  %s156_s27 = sshll.u32 %s306_s2, 4  ;;  %s155_s24 = int_to_ptr.vmem [resolvable:$true] %s154_s24  ;;  %s157_s27 = int_to_ptr.hbm [resolvable:$true] %s156_s27 }
  0x12   :  { %88 = vrot.lane.b32.xlu1 %v87_v8, %s256_s0  ;;  %111 = vrot.lane.b32.xlu2 %v110_v9, %s256_s0 }
  0x24   :  { %64 = vrot.lane.b32.xlu0 %v63_v12, %s256_s0 }
  0x3b   :  { %46 = vadd.xlane.f32.xlu2 %v45_v16 }
  0x3c   :  { %58 = vadd.xlane.f32.xlu1 %v57_v14 }
  0x6c   :  { %v112_v17 = vpop.permute.xlu2 %111 }
  0x6d   :  { %v114_v18 = vsel %vm67_vm1, %v112_v17, 0.0 }
  0x6e   :  { %115 = vadd.xlane.f32.xlu1 %v114_v18 }
  0x83   :  { %v53_v19 = vpop.xlane.xlu0 %52 }
  0x84   :  { %v54_v20 = vmax.f32 %v53_v19, 0.0  ;;  %v89_v21 = vpop.permute.xlu1 %88 }
  0x85   :  { %v91_v22 = vsel %vm67_vm1, %v89_v21, 0.0 }
  0x86   :  { %v96_v23 = vmul.f32 %v54_v20, %v284_v1  ;;  %92 = vadd.xlane.f32.xlu2 %v91_v22  ;;  %v73_v26 = vmul.f32 %v54_v20, %v42_v10  ;;  %v119_v27 = vmul.f32 %v286_v2, %v54_v20 }
  0x88   :  { %98 = vrot.lane.b32.xlu1 %v96_v23, %s257_s1 }
  0x96   :  { %v65_v24 = vpop.permute.xlu0 %64 }
  0x97   :  { %v68_v25 = vsel %vm67_vm1, %v65_v24, 0.0 }
  0x98   :  { %69 = vadd.xlane.f32.xlu0 %v68_v25 }
  0x9e   :  { %75 = vrot.lane.b32.xlu2 %v73_v26, %s257_s1 }
  0xac   :  { %121 = vrot.lane.b32.xlu0 %v119_v27, %s257_s1 }
  0xae   :  { %v47_v33 = vpop.xlane.xlu2 %46 }
  0xaf   :  { %v59_v28 = vpop.xlane.xlu1 %58  ;;  %v48_v35 = vmax.f32 %v47_v33, 0.0 }
  0xb0   :  { %v60_v29 = vmax.f32 %v59_v28, 0.0 }
  0xb1   :  { %v71_v37 = vmul.f32 %v48_v35, %v42_v10  ;;  %v117_v44 = vmul.f32 %v286_v2, %v48_v35  ;;  %v94_v46 = vmul.f32 %v284_v1, %v48_v35 }
  0xb2   :  { %v102_v30 = vmul.f32 %v60_v29, %v284_v1  ;;  %v79_v31 = vmul.f32 %v60_v29, %v42_v10  ;;  %v125_v32 = vmul.f32 %v60_v29, %v286_v2 }
  0xb4   :  { %104 = vrot.lane.b32.xlu1 %v102_v30, %s258_s19  ;;  %81 = vrot.lane.b32.xlu2 %v79_v31, %s258_s19 }
  0xbc   :  { %127 = vrot.lane.b32.xlu2 %v125_v32, %s258_s19 }
  0xe1   :  { %v116_v43 = vpop.xlane.xlu1 %115 }
  0xe2   :  { %v118_v45 = vadd.f32 %v117_v44, %v116_v43 }
  0xf9   :  { %v93_v34 = vpop.xlane.xlu2 %92 }
  0xfa   :  { %v99_v48 = vpop.permute.xlu1 %98  ;;  %v95_v52 = vadd.f32 %v94_v46, %v93_v34 }
  0xfc   :  { %v101_v53 = vadd.f32 %v99_v48, %v95_v52 }
 0x101   :  { %v76_v36 = vpop.permute.xlu2 %75 }
 0x10b   :  { %v70_v38 = vpop.xlane.xlu0 %69 }
 0x10c   :  { %v72_v39 = vadd.f32 %v71_v37, %v70_v38 }
 0x10e   :  { %v78_v40 = vadd.f32 %v76_v36, %v72_v39  ;;  %v82_v41 = vpop.permute.xlu2 %81 }
 0x110   :  { %v84_v42 = vadd.f32 %v82_v41, %v78_v40 }
 0x112   :  { %132 = vrot.lane.b32.xlu0 %v84_v42, %s259_s20 }
 0x116   :  { %v128_v50 = vpop.permute.xlu2 %127 }
 0x11e   :  { %v122_v47 = vpop.permute.xlu0 %121 }
 0x11f   :  { %v124_v49 = vadd.f32 %v122_v47, %v118_v45 }
 0x121   :  { %v130_v51 = vadd.f32 %v128_v50, %v124_v49 }
 0x123   :  { %140 = vrot.lane.b32.xlu2 %v130_v51, %s260_s21 }
 0x126   :  { %v105_v54 = vpop.permute.xlu1 %104 }
 0x127   :  { %v107_v55 = vadd.f32 %v105_v54, %v101_v53 }
 0x129   :  { %136 = vrot.lane.b32.xlu1 %v107_v55, %s261_s22 }
 0x17d   :  { %v141_v58 = vpop.permute.xlu2 %140 }
 0x184   :  { %v133_v56 = vpop.permute.xlu0 %132 }
 0x19b   :  { %v137_v57 = vpop.permute.xlu1 %136 }
 0x19c   :  { %v144_v59 = vsel %vm143_vm2, %v133_v56, %v137_v57 }
 0x19d   :  { %v146_v60 = vsel %vm145_vm3, %v144_v59, %v141_v58 }
 0x19e   :  { %148 = vst.msk [vmem:[#allocation7] sm:$0x1] %vm147_vm4, %v146_v60 }
 0x19f   :  { %159 = dma.vmem_to_hbm [thread:$0]  %s155_s24, 16, %s157_s27, [#allocation4]  }
 0x1a0   :  { %252 = dma.done.wait [#allocation4], 16  }
 0x1a1   :  { %253 = vsyncadd [#allocation4], 4294967280 }
 0x1a2   :  { %164 = vsyncpa [#allocation3], 1 }
 0x1a3   :  { %165 = vsyncpa [#allocation6], 1 }
 0x1a4   :  { %166 = vsyncpa [#allocation4], 1 }

</bundles_post_ra>
